<compile_context>
chip_gen: v6e
topology: v6e:2x2x1
jax: 0.10.0
libtpu: 0.0.40
codegen_flags: <defaults>
</compile_context>

<pallas_src>
import jax
import jax.numpy as jnp
from jax.experimental import pallas as pl
from jax.experimental.pallas import tpu as pltpu


def mlp_kernel(x_ref, w1_ref, b1_ref, w2_ref, b2_ref, o_ref):
    # fc1 on the MXU (f32 accumulation regardless of operand dtype) + bias + ReLU.
    h = jnp.dot(x_ref[...], w1_ref[...], preferred_element_type=jnp.float32)
    h = jnp.maximum(h + b1_ref[...], 0.0)            # (TILE_B, 256) + (1, 256)
    # fc2: cast h to the weight dtype (no-op in f32 mode, bf16 in bf16 mode).
    out = jnp.dot(h.astype(w2_ref.dtype), w2_ref[...],
                  preferred_element_type=jnp.float32)
    o_ref[...] = (out + b2_ref[...]).astype(o_ref.dtype)   # (TILE_B, 10) + (1, 10)


def _choose_tile_b(B, tile_b_max):
    """Pick a batch tile: full batch for small B, >=2 steps for medium/large B."""
    if B <= tile_b_max:
        if B <= 256:
            # Single step; block == full array dim so the (8,128) rule is satisfied.
            return B
        # Medium batch: force >= 2 grid steps so (a) both v7x TensorCores get
        # work and (b) the x DMA overlaps compute instead of prologue->epilogue.
        tile = (pl.cdiv(B, 2) // 8) * 8
        return max(8, tile)
    # Large batch: cap at tile_b_max, rounded down to a multiple of 8 so the
    # (tile_b, K) block satisfies the (8, 128) BlockSpec rule.
    return max(8, (tile_b_max // 8) * 8)


def torch_model_forward(x, w1, b1, w2, b2, *, tile_b_max=1024):
    """x: (B, 784). w1: (784, 256), b1: (256,), w2: (256, 10), b2: (10,).

    Weights are already transposed to (in, out) so the kernel computes
    x @ W1 + b1 -> relu -> @ W2 + b2, matching nn.Linear exactly.

    x may be float32 or bfloat16; it is streamed in its own dtype (no extra
    wrapper-side HBM cast pass).  Weights are cast once to match.
    """
    B, K = x.shape
    H = w1.shape[1]
    N = w2.shape[1]

    # Stream x as-is; only the (tiny, VMEM-resident) weights follow its dtype.
    compute_dtype = x.dtype if x.dtype == jnp.bfloat16 else jnp.float32
    x = x.astype(compute_dtype)            # no-op for f32 or producer-side bf16
    w1 = w1.astype(compute_dtype)
    w2 = w2.astype(compute_dtype)
    b1_2d = b1.reshape(1, H).astype(jnp.float32)
    b2_2d = b2.reshape(1, N).astype(jnp.float32)

    tile_b = _choose_tile_b(B, tile_b_max)
    grid = (pl.cdiv(B, tile_b),)

    # Resident operands: constant index_map -> stay in VMEM across the whole
    # grid; single-buffered (they never change) to save VMEM.
    def resident(shape):
        return pl.BlockSpec(shape, lambda i: (0, 0), pipeline_mode=pl.Buffered(1))

    flops = 2 * B * (K * H + H * N)
    bytes_accessed = (
        x.size * x.dtype.itemsize            # streamed x (dominant)
        + B * N * 4                          # f32 output
        + w1.size * w1.dtype.itemsize + w2.size * w2.dtype.itemsize
        + b1_2d.size * 4 + b2_2d.size * 4)
    cost = pl.CostEstimate(flops=flops, transcendentals=0,
                           bytes_accessed=bytes_accessed)

    return pl.pallas_call(
        mlp_kernel,
        out_shape=jax.ShapeDtypeStruct((B, N), jnp.float32),
        grid_spec=pltpu.PrefetchScalarGridSpec(
            num_scalar_prefetch=0,
            grid=grid,
            in_specs=[
                # Streaming activation tile (double-buffered by the pipeliner).
                pl.BlockSpec((tile_b, K), lambda i: (i, 0)),
                # Weights / biases: VMEM-resident, single-buffered.
                resident((K, H)),
                resident((1, H)),
                resident((H, N)),
                resident((1, N)),
            ],
            out_specs=pl.BlockSpec((tile_b, N), lambda i: (i, 0)),
        ),
        compiler_params=pltpu.CompilerParams(
            # Batch steps are independent -> shard across v7x's 2 TensorCores.
            dimension_semantics=("parallel",),
        ),
        cost_estimate=cost,
    )(x, w1, b1_2d, w2, b2_2d)


if __name__ == "__main__":
    key = jax.random.PRNGKey(0)
    k_x, k_w1, k_b1, k_w2, k_b2, k_x2, k_x3 = jax.random.split(key, 7)

    # Deterministic synthetic parameters (PyTorch shapes: W is (out, in)).
    w1_pt = jax.random.normal(k_w1, (256, 784), dtype=jnp.float32) * 0.02
    b1 = jax.random.normal(k_b1, (256,), dtype=jnp.float32) * 0.02
    w2_pt = jax.random.normal(k_w2, (10, 256), dtype=jnp.float32) * 0.02
    b2 = jax.random.normal(k_b2, (10,), dtype=jnp.float32) * 0.02
    # Transpose once to (in, out) so the kernel does x @ W (== x @ W_pt.T).
    w1 = w1_pt.T
    w2 = w2_pt.T

    def ref_fwd(xx):
        xx = xx.astype(jnp.float32)
        return jnp.maximum(xx @ w1 + b1, 0.0) @ w2 + b2

    # --- Case 1: small batch (B=8), single grid step, f32 path. ---
    B1 = 8
    x1 = jax.random.normal(k_x, (B1, 784), dtype=jnp.float32)
    out1 = jax.block_until_ready(torch_model_forward(x1, w1, b1, w2, b2))
    assert out1.shape == (B1, 10)
    assert jnp.allclose(out1, ref_fwd(x1), atol=1e-4, rtol=1e-4)

    # --- Case 2: multi-step batch tiling (B=64, tile=16 -> grid=(4,)). ---
    B2 = 64
    x2 = jax.random.normal(k_x2, (B2, 784), dtype=jnp.float32)
    out2 = jax.block_until_ready(
        torch_model_forward(x2, w1, b1, w2, b2, tile_b_max=16))
    assert out2.shape == (B2, 10)
    assert jnp.allclose(out2, ref_fwd(x2), atol=1e-4, rtol=1e-4)

    # --- Case 3: ragged last block (B=70, tile=16 -> last block has 6 rows). ---
    B3 = 70
    x3 = jax.random.normal(k_x3, (B3, 784), dtype=jnp.float32)
    out3 = jax.block_until_ready(
        torch_model_forward(x3, w1, b1, w2, b2, tile_b_max=16))
    assert out3.shape == (B3, 10)
    assert jnp.allclose(out3, ref_fwd(x3), atol=1e-4, rtol=1e-4)

    # --- Case 4: producer-side bf16 x (halves streamed bytes; weights follow). ---
    x4 = x2.astype(jnp.bfloat16)
    out4 = jax.block_until_ready(
        torch_model_forward(x4, w1, b1, w2, b2, tile_b_max=16))
    assert out4.shape == (B2, 10)
    assert jnp.allclose(out4, ref_fwd(x4), atol=5e-2, rtol=5e-2)

    print("KERNEL_OK")
</pallas_src>

<mosaic_0001>
module attributes {stable_mosaic.version = 11 : i64} {
  func.func @mlp_kernel(%arg0: i32, %arg1: memref<8x784xf32, #tpu.memory_space<vmem>>, %arg2: memref<784x256xf32, #tpu.memory_space<vmem>>, %arg3: memref<1x256xf32, #tpu.memory_space<vmem>>, %arg4: memref<256x10xf32, #tpu.memory_space<vmem>>, %arg5: memref<1x10xf32, #tpu.memory_space<vmem>>, %arg6: memref<8x10xf32, #tpu.memory_space<vmem>>) attributes {dimension_semantics = [#tpu.dimension_semantics<parallel>], iteration_bounds = array<i64: 1>, scalar_prefetch = 0 : i64, scratch_operands = 0 : i64, tpu.core_type = #tpu.core_type<tc>, window_params = [{transform_indices = @transform_0, window_bounds = array<i64: 8, 784>}, {pipeline_mode = #tpu.pipeline_mode<synchronous>, transform_indices = @transform_1, window_bounds = array<i64: 784, 256>}, {pipeline_mode = #tpu.pipeline_mode<synchronous>, transform_indices = @transform_2, window_bounds = array<i64: 1, 256>}, {pipeline_mode = #tpu.pipeline_mode<synchronous>, transform_indices = @transform_3, window_bounds = array<i64: 256, 10>}, {pipeline_mode = #tpu.pipeline_mode<synchronous>, transform_indices = @transform_4, window_bounds = array<i64: 1, 10>}, {transform_indices = @transform_5, window_bounds = array<i64: 8, 10>}]} {
    %c0 = arith.constant 0 : index
    %c0_0 = arith.constant 0 : index
    %0 = vector.load %arg1[%c0, %c0_0] : memref<8x784xf32, #tpu.memory_space<vmem>>, vector<8x784xf32>
    %c0_1 = arith.constant 0 : index
    %c0_2 = arith.constant 0 : index
    %1 = vector.load %arg2[%c0_1, %c0_2] : memref<784x256xf32, #tpu.memory_space<vmem>>, vector<784x256xf32>
    %cst = arith.constant dense<0.000000e+00> : vector<8x256xf32>
    %2 = tpu.matmul %0, %1, %cst {dimension_numbers = #tpu.dot_dimension_numbers<[1], [0], [0], [1], [0, 0, 1, 1], [], []>} : vector<8x784xf32>, vector<784x256xf32>, vector<8x256xf32> -> vector<8x256xf32>
    %c0_3 = arith.constant 0 : index
    %c0_4 = arith.constant 0 : index
    %3 = vector.load %arg3[%c0_3, %c0_4] : memref<1x256xf32, #tpu.memory_space<vmem>>, vector<1x256xf32>
    %4 = vector.broadcast %3 : vector<1x256xf32> to vector<8x256xf32>
    %5 = arith.addf %2, %4 : vector<8x256xf32>
    %cst_5 = arith.constant 0.000000e+00 : f32
    %6 = vector.broadcast %cst_5 : f32 to vector<8x256xf32>
    %7 = arith.maximumf %5, %6 : vector<8x256xf32>
    %c0_6 = arith.constant 0 : index
    %c0_7 = arith.constant 0 : index
    %8 = vector.load %arg4[%c0_6, %c0_7] : memref<256x10xf32, #tpu.memory_space<vmem>>, vector<256x10xf32>
    %cst_8 = arith.constant dense<0.000000e+00> : vector<8x10xf32>
    %9 = tpu.matmul %7, %8, %cst_8 {dimension_numbers = #tpu.dot_dimension_numbers<[1], [0], [0], [1], [0, 0, 1, 1], [], []>} : vector<8x256xf32>, vector<256x10xf32>, vector<8x10xf32> -> vector<8x10xf32>
    %c0_9 = arith.constant 0 : index
    %c0_10 = arith.constant 0 : index
    %10 = vector.load %arg5[%c0_9, %c0_10] : memref<1x10xf32, #tpu.memory_space<vmem>>, vector<1x10xf32>
    %11 = vector.broadcast %10 : vector<1x10xf32> to vector<8x10xf32>
    %12 = arith.addf %9, %11 : vector<8x10xf32>
    %c0_11 = arith.constant 0 : index
    %c0_12 = arith.constant 0 : index
    %13 = vector.load %arg6[%c0_11, %c0_12] : memref<8x10xf32, #tpu.memory_space<vmem>>, vector<8x10xf32>
    tpu.vector_store %arg6[%c0_11, %c0_12], %12 {strides = array<i32>} : memref<8x10xf32, #tpu.memory_space<vmem>>, vector<8x10xf32>,
    return
  }
  func.func @transform_0(%arg0: i32) -> (i32, i32) {
    %c0_i32 = arith.constant 0 : i32
    %c0_i32_0 = arith.constant 0 : i32
    return %arg0, %c0_i32 : i32, i32
  }
  func.func @transform_1(%arg0: i32) -> (i32, i32) {
    %c0_i32 = arith.constant 0 : i32
    %c0_i32_0 = arith.constant 0 : i32
    %c0_i32_1 = arith.constant 0 : i32
    return %c0_i32, %c0_i32_0 : i32, i32
  }
  func.func @transform_2(%arg0: i32) -> (i32, i32) {
    %c0_i32 = arith.constant 0 : i32
    %c0_i32_0 = arith.constant 0 : i32
    %c0_i32_1 = arith.constant 0 : i32
    return %c0_i32, %c0_i32_0 : i32, i32
  }
  func.func @transform_3(%arg0: i32) -> (i32, i32) {
    %c0_i32 = arith.constant 0 : i32
    %c0_i32_0 = arith.constant 0 : i32
    %c0_i32_1 = arith.constant 0 : i32
    return %c0_i32, %c0_i32_0 : i32, i32
  }
  func.func @transform_4(%arg0: i32) -> (i32, i32) {
    %c0_i32 = arith.constant 0 : i32
    %c0_i32_0 = arith.constant 0 : i32
    %c0_i32_1 = arith.constant 0 : i32
    return %c0_i32, %c0_i32_0 : i32, i32
  }
  func.func @transform_5(%arg0: i32) -> (i32, i32) {
    %c0_i32 = arith.constant 0 : i32
    %c0_i32_0 = arith.constant 0 : i32
    return %arg0, %c0_i32 : i32, i32
  }
}

</mosaic_0001>

<bundles_post_ra>
// kernel: tpu_custom_call.1
= control target key start
LH: loop header
LB: loop body
LE: loop exit
PB: predicated region body
PF: predicated region fallthrough
CT: control target
= control target key end

     0   :  { %10 = vsyncpa [#allocation3], 0  ;;  %s916_s0 = inlined_call_operand.vmem [shape: f32[8,784], index: 0, kind: input, shape index: {}]   ;;  %s917_s1 = inlined_call_operand.hbm [shape: f32[784,256], index: 1, kind: input, shape index: {}]   ;;  %s918_s2 = inlined_call_operand.vmem [shape: f32[1,256], index: 2, kind: input, shape index: {}]   ;;  %s919_s3 = inlined_call_operand.vmem [shape: f32[256,10], index: 3, kind: input, shape index: {}]   ;;  %s920_s4 = inlined_call_operand.vmem [shape: f32[1,10], index: 4, kind: input, shape index: {}]   ;;  %s921_s5 = inlined_call_operand.hbm [shape: f32[8,10], index: 5, kind: output, shape index: {}]  }
   0x1   :  { %11 = vsyncpa [#allocation4], 0  ;;  %s752_s18 = smov [#allocation2]  }
   0x2   :  { %s19_s19 = sshll.u32 %s752_s18, 4  ;;  %s20_s19 = int_to_ptr.vmem [resolvable:$true] %s19_s19 }
   0x3   :  { %s716_s20 = scalar_lea.vmem %s20_s19, 25088  ;;  %p721_p1 = scmp.lt.s32.totalorder %s20_s19, %s20_s19 }
   0x4   :  { %p717_p0 = scmp.ne.s32.totalorder %s20_s19, %s716_s20  ;;  %p722_p2 = scmp.lt.s32.totalorder %s716_s20, %s716_s20 }
   0x6   :  { %p723_p3 = por %p722_p2, %p721_p1 }
   0x8   :  { %p724_p4 = pnand %p723_p3, %p717_p0 }
   0xa   :  { %727 = shalt.err (!%p724_p4)
}
   0xb   :  { %s753_s21 = smov 256   ;;  %s754_s22 = smov 16  }
   0xc   :  { %25 = dma.hbm_to_vmem [thread:$0]  %s917_s1, 25088, %s20_s19, [#allocation3], %s753_s21, %s753_s21, %s754_s22  }
   0xd   :  { %748 = dma.done.wait [#allocation3], 25088  }
   0xe   :  { %749 = vsyncadd [#allocation3], 4294942208  ;;  %v73_v0 = vld [vmem:[#allocation2 + $0xf8] sm:$0xff]  ;;  %v72_v1 = vld [vmem:[#allocation2 + $0xf0] sm:$0xff]  ;;  %vm250_vm0 = vcmask 130048   ;;  %s756_s24 = smov [#allocation5]  }
   0xf   :  { %v71_v2 = vld [vmem:[#allocation2 + $0xe8] sm:$0xff]  ;;  %254 = vmatprep.subr.mxu0 %v73_v0  ;;  %v137_v3 = vld [vmem:[#allocation2 + $0x2f8] sm:$0xff]  ;;  %v70_v4 = vld [vmem:[#allocation2 + $0xe0] sm:$0xff]  ;;  %s657_s1 = sshll.u32 %s756_s24, 4  ;;  %vm649_vm1 = vcmask 80896   ;;  %s658_s1 = int_to_ptr.vmem [resolvable:$true] %s657_s1 }
  0x10   :  { %v136_v5 = vld [vmem:[#allocation2 + $0x2f0] sm:$0xff]  ;;  %255 = vmatpush1.msra.mxu0 %v72_v1  ;;  %325 = vmatprep.subr.mxu1 %v137_v3  ;;  %v69_v6 = vld [vmem:[#allocation2 + $0xd8] sm:$0xff]  ;;  %v135_v7 = vld [vmem:[#allocation2 + $0x2e8] sm:$0xff]  ;;  %s728_s25 = scalar_lea.vmem %s658_s1, 128  ;;  %p733_p6 = scmp.lt.s32.totalorder %s658_s1, %s658_s1 }
  0x11   :  { %256 = vmatprep.subr.mxu0 %v71_v2  ;;  %326 = vmatpush1.msra.mxu1 %v136_v5  ;;  %v68_v8 = vld [vmem:[#allocation2 + $0xd0] sm:$0xff]  ;;  %v134_v9 = vld [vmem:[#allocation2 + $0x2e0] sm:$0xff]  ;;  %v133_v10 = vld [vmem:[#allocation2 + $0x2d8] sm:$0xff]  ;;  %p729_p5 = scmp.ne.s32.totalorder %s658_s1, %s728_s25  ;;  %p734_p7 = scmp.lt.s32.totalorder %s728_s25, %s728_s25 }
  0x12   :  { %257 = vmatpush1.msra.mxu0 %v70_v4  ;;  %327 = vmatprep.subr.mxu1 %v135_v7  ;;  %v67_v11 = vld [vmem:[#allocation2 + $0xc8] sm:$0xff]  ;;  %v132_v12 = vld [vmem:[#allocation2 + $0x2d0] sm:$0xff]  ;;  %v66_v13 = vld [vmem:[#allocation2 + $0xc0] sm:$0xff] }
  0x13   :  { %258 = vmatprep.subr.mxu0 %v69_v6  ;;  %328 = vmatpush1.msra.mxu1 %v134_v9  ;;  %v131_v14 = vld [vmem:[#allocation2 + $0x2c8] sm:$0xff]  ;;  %v65_v15 = vld [vmem:[#allocation2 + $0xb8] sm:$0xff]  ;;  %v130_v16 = vld [vmem:[#allocation2 + $0x2c0] sm:$0xff]  ;;  %p735_p8 = por %p734_p7, %p733_p6 }
  0x14   :  { %259 = vmatpush1.msra.mxu0 %v68_v8  ;;  %329 = vmatprep.subr.mxu1 %v133_v10  ;;  %v64_v17 = vld [vmem:[#allocation2 + $0xb0] sm:$0xff]  ;;  %v129_v18 = vld [vmem:[#allocation2 + $0x2b8] sm:$0xff]  ;;  %v63_v19 = vld [vmem:[#allocation2 + $0xa8] sm:$0xff] }
  0x15   :  { %260 = vmatprep.subr.mxu0 %v67_v11  ;;  %330 = vmatpush1.msra.mxu1 %v132_v12  ;;  %v128_v20 = vld [vmem:[#allocation2 + $0x2b0] sm:$0xff]  ;;  %v62_v21 = vld [vmem:[#allocation2 + $0xa0] sm:$0xff]  ;;  %v127_v22 = vld [vmem:[#allocation2 + $0x2a8] sm:$0xff]  ;;  %p736_p9 = pnand %p735_p8, %p729_p5 }
  0x16   :  { %261 = vmatpush1.msra.mxu0 %v66_v13  ;;  %331 = vmatprep.subr.mxu1 %v131_v14  ;;  %v61_v23 = vld [vmem:[#allocation2 + $0x98] sm:$0xff]  ;;  %v126_v24 = vld [vmem:[#allocation2 + $0x2a0] sm:$0xff]  ;;  %v60_v25 = vld [vmem:[#allocation2 + $0x90] sm:$0xff] }
  0x17   :  { %262 = vmatprep.subr.mxu0 %v65_v15  ;;  %332 = vmatpush1.msra.mxu1 %v130_v16  ;;  %v125_v26 = vld [vmem:[#allocation2 + $0x298] sm:$0xff]  ;;  %v59_v27 = vld [vmem:[#allocation2 + $0x88] sm:$0xff]  ;;  %v124_v28 = vld [vmem:[#allocation2 + $0x290] sm:$0xff] }
  0x18   :  { %263 = vmatpush1.msra.mxu0 %v64_v17  ;;  %333 = vmatprep.subr.mxu1 %v129_v18  ;;  %v58_v29 = vld [vmem:[#allocation2 + $0x80] sm:$0xff]  ;;  %v123_v30 = vld [vmem:[#allocation2 + $0x288] sm:$0xff]  ;;  %v57_v31 = vld [vmem:[#allocation2 + $0x78] sm:$0xff] }
  0x19   :  { %264 = vmatprep.subr.mxu0 %v63_v19  ;;  %334 = vmatpush1.msra.mxu1 %v128_v20  ;;  %v122_v32 = vld [vmem:[#allocation2 + $0x280] sm:$0xff]  ;;  %v56_v33 = vld [vmem:[#allocation2 + $0x70] sm:$0xff]  ;;  %v121_v34 = vld [vmem:[#allocation2 + $0x278] sm:$0xff] }
  0x1a   :  { %265 = vmatpush1.msra.mxu0 %v62_v21  ;;  %335 = vmatprep.subr.mxu1 %v127_v22  ;;  %v55_v35 = vld [vmem:[#allocation2 + $0x68] sm:$0xff]  ;;  %v120_v36 = vld [vmem:[#allocation2 + $0x270] sm:$0xff]  ;;  %v54_v37 = vld [vmem:[#allocation2 + $0x60] sm:$0xff] }
  0x1b   :  { %266 = vmatprep.subr.mxu0 %v61_v23  ;;  %336 = vmatpush1.msra.mxu1 %v126_v24  ;;  %v119_v38 = vld [vmem:[#allocation2 + $0x268] sm:$0xff]  ;;  %v53_v39 = vld [vmem:[#allocation2 + $0x58] sm:$0xff]  ;;  %v118_v40 = vld [vmem:[#allocation2 + $0x260] sm:$0xff] }
  0x1c   :  { %267 = vmatpush1.msra.mxu0 %v60_v25  ;;  %337 = vmatprep.subr.mxu1 %v125_v26  ;;  %v52_v41 = vld [vmem:[#allocation2 + $0x50] sm:$0xff]  ;;  %v117_v42 = vld [vmem:[#allocation2 + $0x258] sm:$0xff]  ;;  %v51_v43 = vld [vmem:[#allocation2 + $0x48] sm:$0xff] }
  0x1d   :  { %268 = vmatprep.subr.mxu0 %v59_v27  ;;  %338 = vmatpush1.msra.mxu1 %v124_v28  ;;  %v116_v44 = vld [vmem:[#allocation2 + $0x250] sm:$0xff]  ;;  %v50_v45 = vld [vmem:[#allocation2 + $0x40] sm:$0xff]  ;;  %v115_v46 = vld [vmem:[#allocation2 + $0x248] sm:$0xff] }
  0x1e   :  { %269 = vmatpush1.msra.mxu0 %v58_v29  ;;  %339 = vmatprep.subr.mxu1 %v123_v30  ;;  %v49_v47 = vld [vmem:[#allocation2 + $0x38] sm:$0xff]  ;;  %v114_v48 = vld [vmem:[#allocation2 + $0x240] sm:$0xff]  ;;  %v48_v49 = vld [vmem:[#allocation2 + $0x30] sm:$0xff] }
  0x1f   :  { %270 = vmatprep.subr.mxu0 %v57_v31  ;;  %340 = vmatpush1.msra.mxu1 %v122_v32  ;;  %v113_v50 = vld [vmem:[#allocation2 + $0x238] sm:$0xff]  ;;  %v47_v51 = vld [vmem:[#allocation2 + $0x28] sm:$0xff]  ;;  %v112_v52 = vld [vmem:[#allocation2 + $0x230] sm:$0xff] }
  0x20   :  { %271 = vmatpush1.msra.mxu0 %v56_v33  ;;  %341 = vmatprep.subr.mxu1 %v121_v34  ;;  %v46_v53 = vld [vmem:[#allocation2 + $0x20] sm:$0xff]  ;;  %v111_v54 = vld [vmem:[#allocation2 + $0x228] sm:$0xff]  ;;  %v45_v55 = vld [vmem:[#allocation2 + $0x18] sm:$0xff] }
  0x21   :  { %272 = vmatprep.subr.mxu0 %v55_v35  ;;  %342 = vmatpush1.msra.mxu1 %v120_v36  ;;  %v110_v56 = vld [vmem:[#allocation2 + $0x220] sm:$0xff]  ;;  %v44_v57 = vld [vmem:[#allocation2 + $0x10] sm:$0xff]  ;;  %v109_v58 = vld [vmem:[#allocation2 + $0x218] sm:$0xff] }
  0x22   :  { %273 = vmatpush1.msra.mxu0 %v54_v37  ;;  %343 = vmatprep.subr.mxu1 %v119_v38  ;;  %v43_v59 = vld [vmem:[#allocation2 + $0x8] sm:$0xff]  ;;  %v108_v60 = vld [vmem:[#allocation2 + $0x210] sm:$0xff]  ;;  %v42_v61 = vld [vmem:[#allocation2] sm:$0xff] }
  0x23   :  { %274 = vmatprep.subr.mxu0 %v53_v39  ;;  %344 = vmatpush1.msra.mxu1 %v118_v40  ;;  %v107_v62 = vld [vmem:[#allocation2 + $0x208] sm:$0xff]  ;;  %v105_v63 = vld [vmem:[#allocation2 + $0x1f8] sm:$0xff]  ;;  %v106_v0 = vld [vmem:[#allocation2 + $0x200] sm:$0xff] }
  0x24   :  { %275 = vmatpush1.msra.mxu0 %v52_v41  ;;  %345 = vmatprep.subr.mxu1 %v117_v42  ;;  %v104_v1 = vld [vmem:[#allocation2 + $0x1f0] sm:$0xff]  ;;  %v169_v2 = vld [vmem:[#allocation2 + $0x3f8] sm:$0xff]  ;;  %v103_v3 = vld [vmem:[#allocation2 + $0x1e8] sm:$0xff] }
  0x25   :  { %276 = vmatprep.subr.mxu0 %v51_v43  ;;  %346 = vmatpush1.msra.mxu1 %v116_v44  ;;  %v168_v4 = vld [vmem:[#allocation2 + $0x3f0] sm:$0xff]  ;;  %v102_v5 = vld [vmem:[#allocation2 + $0x1e0] sm:$0xff]  ;;  %v167_v6 = vld [vmem:[#allocation2 + $0x3e8] sm:$0xff] }
  0x26   :  { %277 = vmatpush1.msra.mxu0 %v50_v45  ;;  %347 = vmatprep.subr.mxu1 %v115_v46  ;;  %v101_v7 = vld [vmem:[#allocation2 + $0x1d8] sm:$0xff]  ;;  %v166_v8 = vld [vmem:[#allocation2 + $0x3e0] sm:$0xff]  ;;  %v100_v9 = vld [vmem:[#allocation2 + $0x1d0] sm:$0xff] }
  0x27   :  { %278 = vmatprep.subr.mxu0 %v49_v47  ;;  %348 = vmatpush1.msra.mxu1 %v114_v48  ;;  %v165_v10 = vld [vmem:[#allocation2 + $0x3d8] sm:$0xff]  ;;  %v99_v11 = vld [vmem:[#allocation2 + $0x1c8] sm:$0xff]  ;;  %v164_v12 = vld [vmem:[#allocation2 + $0x3d0] sm:$0xff] }
  0x28   :  { %279 = vmatpush1.msra.mxu0 %v48_v49  ;;  %349 = vmatprep.subr.mxu1 %v113_v50  ;;  %v98_v13 = vld [vmem:[#allocation2 + $0x1c0] sm:$0xff]  ;;  %v163_v14 = vld [vmem:[#allocation2 + $0x3c8] sm:$0xff]  ;;  %v97_v15 = vld [vmem:[#allocation2 + $0x1b8] sm:$0xff] }
  0x29   :  { %280 = vmatprep.subr.mxu0 %v47_v51  ;;  %350 = vmatpush1.msra.mxu1 %v112_v52  ;;  %v162_v16 = vld [vmem:[#allocation2 + $0x3c0] sm:$0xff]  ;;  %v96_v17 = vld [vmem:[#allocation2 + $0x1b0] sm:$0xff]  ;;  %v161_v18 = vld [vmem:[#allocation2 + $0x3b8] sm:$0xff] }
  0x2a   :  { %281 = vmatpush1.msra.mxu0 %v46_v53  ;;  %351 = vmatprep.subr.mxu1 %v111_v54  ;;  %v95_v19 = vld [vmem:[#allocation2 + $0x1a8] sm:$0xff]  ;;  %v160_v20 = vld [vmem:[#allocation2 + $0x3b0] sm:$0xff]  ;;  %v94_v21 = vld [vmem:[#allocation2 + $0x1a0] sm:$0xff] }
  0x2b   :  { %282 = vmatprep.subr.mxu0 %v45_v55  ;;  %352 = vmatpush1.msra.mxu1 %v110_v56  ;;  %v159_v22 = vld [vmem:[#allocation2 + $0x3a8] sm:$0xff]  ;;  %v93_v23 = vld [vmem:[#allocation2 + $0x198] sm:$0xff]  ;;  %v158_v24 = vld [vmem:[#allocation2 + $0x3a0] sm:$0xff] }
  0x2c   :  { %283 = vmatpush1.msra.mxu0 %v44_v57  ;;  %353 = vmatprep.subr.mxu1 %v109_v58  ;;  %v92_v25 = vld [vmem:[#allocation2 + $0x190] sm:$0xff]  ;;  %v157_v26 = vld [vmem:[#allocation2 + $0x398] sm:$0xff]  ;;  %v91_v27 = vld [vmem:[#allocation2 + $0x188] sm:$0xff] }
  0x2d   :  { %284 = vmatprep.subr.mxu0 %v43_v59  ;;  %354 = vmatpush1.msra.mxu1 %v108_v60  ;;  %v156_v28 = vld [vmem:[#allocation2 + $0x390] sm:$0xff]  ;;  %v90_v29 = vld [vmem:[#allocation2 + $0x180] sm:$0xff]  ;;  %v155_v30 = vld [vmem:[#allocation2 + $0x388] sm:$0xff] }
  0x2e   :  { %285 = vmatpush1.msra.mxu0 %v42_v61  ;;  %355 = vmatprep.subr.mxu1 %v107_v62  ;;  %v89_v31 = vld [vmem:[#allocation2 + $0x178] sm:$0xff]  ;;  %v154_v32 = vld [vmem:[#allocation2 + $0x380] sm:$0xff]  ;;  %v88_v33 = vld [vmem:[#allocation2 + $0x170] sm:$0xff] }
  0x2f   :  { %286 = vmatprep.subr.mxu0 %v105_v63  ;;  %356 = vmatpush1.msra.mxu1 %v106_v0  ;;  %v153_v34 = vld [vmem:[#allocation2 + $0x378] sm:$0xff]  ;;  %v87_v35 = vld [vmem:[#allocation2 + $0x168] sm:$0xff]  ;;  %v152_v36 = vld [vmem:[#allocation2 + $0x370] sm:$0xff] }
  0x30   :  { %287 = vmatpush2.msra.mxu0 %v104_v1  ;;  %357 = vmatprep.subr.mxu1 %v169_v2  ;;  %v86_v37 = vld [vmem:[#allocation2 + $0x160] sm:$0xff]  ;;  %v151_v38 = vld [vmem:[#allocation2 + $0x368] sm:$0xff]  ;;  %v85_v39 = vld [vmem:[#allocation2 + $0x158] sm:$0xff] }
  0x31   :  { %288 = vmatprep.subr.mxu0 %v103_v3  ;;  %358 = vmatpush2.msra.mxu1 %v168_v4  ;;  %v150_v40 = vld [vmem:[#allocation2 + $0x360] sm:$0xff]  ;;  %v84_v41 = vld [vmem:[#allocation2 + $0x150] sm:$0xff]  ;;  %v149_v42 = vld [vmem:[#allocation2 + $0x358] sm:$0xff] }
  0x32   :  { %289 = vmatpush2.msra.mxu0 %v102_v5  ;;  %359 = vmatprep.subr.mxu1 %v167_v6  ;;  %v83_v43 = vld [vmem:[#allocation2 + $0x148] sm:$0xff]  ;;  %v148_v44 = vld [vmem:[#allocation2 + $0x350] sm:$0xff]  ;;  %v82_v45 = vld [vmem:[#allocation2 + $0x140] sm:$0xff] }
  0x33   :  { %290 = vmatprep.subr.mxu0 %v101_v7  ;;  %360 = vmatpush2.msra.mxu1 %v166_v8  ;;  %v147_v46 = vld [vmem:[#allocation2 + $0x348] sm:$0xff]  ;;  %v81_v47 = vld [vmem:[#allocation2 + $0x138] sm:$0xff]  ;;  %v146_v48 = vld [vmem:[#allocation2 + $0x340] sm:$0xff] }
  0x34   :  { %291 = vmatpush2.msra.mxu0 %v100_v9  ;;  %361 = vmatprep.subr.mxu1 %v165_v10  ;;  %v80_v49 = vld [vmem:[#allocation2 + $0x130] sm:$0xff]  ;;  %v145_v50 = vld [vmem:[#allocation2 + $0x338] sm:$0xff]  ;;  %v79_v51 = vld [vmem:[#allocation2 + $0x128] sm:$0xff] }
  0x35   :  { %292 = vmatprep.subr.mxu0 %v99_v11  ;;  %362 = vmatpush2.msra.mxu1 %v164_v12  ;;  %v144_v52 = vld [vmem:[#allocation2 + $0x330] sm:$0xff]  ;;  %v78_v53 = vld [vmem:[#allocation2 + $0x120] sm:$0xff]  ;;  %v143_v54 = vld [vmem:[#allocation2 + $0x328] sm:$0xff] }
  0x36   :  { %293 = vmatpush2.msra.mxu0 %v98_v13  ;;  %363 = vmatprep.subr.mxu1 %v163_v14  ;;  %v77_v55 = vld [vmem:[#allocation2 + $0x118] sm:$0xff]  ;;  %v142_v56 = vld [vmem:[#allocation2 + $0x320] sm:$0xff]  ;;  %v76_v57 = vld [vmem:[#allocation2 + $0x110] sm:$0xff] }
  0x37   :  { %294 = vmatprep.subr.mxu0 %v97_v15  ;;  %364 = vmatpush2.msra.mxu1 %v162_v16  ;;  %v141_v58 = vld [vmem:[#allocation2 + $0x318] sm:$0xff]  ;;  %v75_v59 = vld [vmem:[#allocation2 + $0x108] sm:$0xff]  ;;  %v74_v61 = vld [vmem:[#allocation2 + $0x100] sm:$0xff] }
  0x38   :  { %295 = vmatpush2.msra.mxu0 %v96_v17  ;;  %365 = vmatprep.subr.mxu1 %v161_v18  ;;  %v36_v60 = vld [vmem:[%s916_s0 + $0x8] sm:$0xff]  ;;  %v140_v62 = vld [vmem:[#allocation2 + $0x310] sm:$0xff]  ;;  %v35_v63 = vld [vmem:[%s916_s0] sm:$0xff] }
  0x39   :  { %296 = vmatprep.subr.mxu0 %v95_v19  ;;  %366 = vmatpush2.msra.mxu1 %v160_v20  ;;  %v139_v0 = vld [vmem:[#allocation2 + $0x308] sm:$0xff]  ;;  %v201_v1 = vld [vmem:[#allocation2 + $0x4f8] sm:$0xff]  ;;  %v138_v2 = vld [vmem:[#allocation2 + $0x300] sm:$0xff] }
  0x3a   :  { %297 = vmatpush2.msra.mxu0 %v94_v21  ;;  %367 = vmatprep.subr.mxu1 %v159_v22  ;;  %v38_v3 = vld [vmem:[%s916_s0 + $0x18] sm:$0xff]  ;;  %v200_v4 = vld [vmem:[#allocation2 + $0x4f0] sm:$0xff]  ;;  %v199_v6 = vld [vmem:[#allocation2 + $0x4e8] sm:$0xff]  ;;  %v755_v22 = vmov 0.0  }
  0x3b   :  { %298 = vmatprep.subr.mxu0 %v93_v23  ;;  %368 = vmatpush2.msra.mxu1 %v158_v24  ;;  %v37_v5 = vld [vmem:[%s916_s0 + $0x10] sm:$0xff]  ;;  %v198_v7 = vld [vmem:[#allocation2 + $0x4e0] sm:$0xff]  ;;  %v237_v8 = vld [vmem:[#allocation2 + $0x618] sm:$0xff] }
  0x3c   :  { %299 = vmatpush2.msra.mxu0 %v92_v25  ;;  %369 = vmatprep.subr.mxu1 %v157_v26  ;;  %v197_v9 = vld [vmem:[#allocation2 + $0x4d8] sm:$0xff]  ;;  %v236_v10 = vld [vmem:[#allocation2 + $0x610] sm:$0xff]  ;;  %v235_v12 = vld [vmem:[#allocation2 + $0x608] sm:$0xff] }
  0x3d   :  { %300 = vmatprep.subr.mxu0 %v91_v27  ;;  %370 = vmatpush2.msra.mxu1 %v156_v28  ;;  %v196_v11 = vld [vmem:[#allocation2 + $0x4d0] sm:$0xff]  ;;  %v195_v13 = vld [vmem:[#allocation2 + $0x4c8] sm:$0xff]  ;;  %v194_v15 = vld [vmem:[#allocation2 + $0x4c0] sm:$0xff] }
  0x3e   :  { %301 = vmatpush2.msra.mxu0 %v90_v29  ;;  %371 = vmatprep.subr.mxu1 %v155_v30  ;;  %v40_v14 = vld [vmem:[%s916_s0 + $0x28] sm:$0xff]  ;;  %v234_v16 = vld [vmem:[#allocation2 + $0x600] sm:$0xff]  ;;  %v193_v17 = vld [vmem:[#allocation2 + $0x4b8] sm:$0xff] }
  0x3f   :  { %302 = vmatprep.subr.mxu0 %v89_v31  ;;  %372 = vmatpush2.msra.mxu1 %v154_v32  ;;  %v192_v18 = vld [vmem:[#allocation2 + $0x4b0] sm:$0xff]  ;;  %v191_v20 = vld [vmem:[#allocation2 + $0x4a8] sm:$0xff]  ;;  %v190_v21 = vld [vmem:[#allocation2 + $0x4a0] sm:$0xff] }
  0x40   :  { %303 = vmatpush2.msra.mxu0 %v88_v33  ;;  %373 = vmatprep.subr.mxu1 %v153_v34  ;;  %v41_v19 = vld [vmem:[%s916_s0 + $0x30] sm:$0xff]  ;;  %v189_v23 = vld [vmem:[#allocation2 + $0x498] sm:$0xff]  ;;  %v187_v25 = vld [vmem:[#allocation2 + $0x488] sm:$0xff] }
  0x41   :  { %304 = vmatprep.subr.mxu0 %v87_v35  ;;  %374 = vmatpush2.msra.mxu1 %v152_v36  ;;  %v188_v24 = vld [vmem:[#allocation2 + $0x490] sm:$0xff]  ;;  %v186_v26 = vld [vmem:[#allocation2 + $0x480] sm:$0xff]  ;;  %v185_v27 = vld [vmem:[#allocation2 + $0x478] sm:$0xff] }
  0x42   :  { %305 = vmatpush2.msra.mxu0 %v86_v37  ;;  %375 = vmatprep.subr.mxu1 %v151_v38  ;;  %v184_v28 = vld [vmem:[#allocation2 + $0x470] sm:$0xff]  ;;  %v183_v29 = vld [vmem:[#allocation2 + $0x468] sm:$0xff]  ;;  %v182_v30 = vld [vmem:[#allocation2 + $0x460] sm:$0xff] }
  0x43   :  { %306 = vmatprep.subr.mxu0 %v85_v39  ;;  %376 = vmatpush2.msra.mxu1 %v150_v40  ;;  %v181_v31 = vld [vmem:[#allocation2 + $0x458] sm:$0xff]  ;;  %v180_v32 = vld [vmem:[#allocation2 + $0x450] sm:$0xff]  ;;  %v179_v33 = vld [vmem:[#allocation2 + $0x448] sm:$0xff] }
  0x44   :  { %307 = vmatpush2.msra.mxu0 %v84_v41  ;;  %377 = vmatprep.subr.mxu1 %v149_v42  ;;  %v178_v34 = vld [vmem:[#allocation2 + $0x440] sm:$0xff]  ;;  %v177_v35 = vld [vmem:[#allocation2 + $0x438] sm:$0xff]  ;;  %v176_v36 = vld [vmem:[#allocation2 + $0x430] sm:$0xff] }
  0x45   :  { %308 = vmatprep.subr.mxu0 %v83_v43  ;;  %378 = vmatpush2.msra.mxu1 %v148_v44  ;;  %v175_v37 = vld [vmem:[#allocation2 + $0x428] sm:$0xff]  ;;  %v174_v38 = vld [vmem:[#allocation2 + $0x420] sm:$0xff]  ;;  %v173_v39 = vld [vmem:[#allocation2 + $0x418] sm:$0xff] }
  0x46   :  { %309 = vmatpush2.msra.mxu0 %v82_v45  ;;  %379 = vmatprep.subr.mxu1 %v147_v46  ;;  %v172_v40 = vld [vmem:[#allocation2 + $0x410] sm:$0xff]  ;;  %v171_v41 = vld [vmem:[#allocation2 + $0x408] sm:$0xff]  ;;  %v170_v42 = vld [vmem:[#allocation2 + $0x400] sm:$0xff] }
  0x47   :  { %310 = vmatprep.subr.mxu0 %v81_v47  ;;  %380 = vmatpush2.msra.mxu1 %v146_v48  ;;  %v233_v43 = vld [vmem:[#allocation2 + $0x5f8] sm:$0xff]  ;;  %v232_v44 = vld [vmem:[#allocation2 + $0x5f0] sm:$0xff]  ;;  %v231_v45 = vld [vmem:[#allocation2 + $0x5e8] sm:$0xff] }
  0x48   :  { %311 = vmatpush2.msra.mxu0 %v80_v49  ;;  %381 = vmatprep.subr.mxu1 %v145_v50  ;;  %v230_v46 = vld [vmem:[#allocation2 + $0x5e0] sm:$0xff]  ;;  %v229_v47 = vld [vmem:[#allocation2 + $0x5d8] sm:$0xff]  ;;  %v228_v48 = vld [vmem:[#allocation2 + $0x5d0] sm:$0xff] }
  0x49   :  { %312 = vmatprep.subr.mxu0 %v79_v51  ;;  %382 = vmatpush2.msra.mxu1 %v144_v52  ;;  %v227_v49 = vld [vmem:[#allocation2 + $0x5c8] sm:$0xff]  ;;  %v226_v50 = vld [vmem:[#allocation2 + $0x5c0] sm:$0xff]  ;;  %v225_v51 = vld [vmem:[#allocation2 + $0x5b8] sm:$0xff] }
  0x4a   :  { %313 = vmatpush2.msra.mxu0 %v78_v53  ;;  %383 = vmatprep.subr.mxu1 %v143_v54  ;;  %v224_v52 = vld [vmem:[#allocation2 + $0x5b0] sm:$0xff]  ;;  %v223_v53 = vld [vmem:[#allocation2 + $0x5a8] sm:$0xff]  ;;  %v222_v54 = vld [vmem:[#allocation2 + $0x5a0] sm:$0xff] }
  0x4b   :  { %314 = vmatprep.subr.mxu0 %v77_v55  ;;  %384 = vmatpush2.msra.mxu1 %v142_v56  ;;  %v221_v55 = vld [vmem:[#allocation2 + $0x598] sm:$0xff]  ;;  %v220_v56 = vld [vmem:[#allocation2 + $0x590] sm:$0xff] }
  0x4c   :  { %315 = vmatpush2.msra.mxu0 %v76_v57  ;;  %385 = vmatprep.subr.mxu1 %v141_v58  ;;  %v219_v57 = vld [vmem:[#allocation2 + $0x588] sm:$0xff]  ;;  %v218_v58 = vld [vmem:[#allocation2 + $0x580] sm:$0xff] }
  0x4d   :  { %316 = vmatprep.subr.mxu0 %v75_v59  ;;  %318 = vmatprep.mubr.f32.mxu0 %v36_v60  ;;  %v217_v59 = vld [vmem:[#allocation2 + $0x578] sm:$0xff]  ;;  %v216_v60 = vld [vmem:[#allocation2 + $0x570] sm:$0xff] }
  0x4e   :  { %317 = vmatpush2.msra.mxu0 %v74_v61  ;;  %386 = vmatpush2.msra.mxu1 %v140_v62  ;;  %v215_v61 = vld [vmem:[#allocation2 + $0x568] sm:$0xff]  ;;  %v214_v62 = vld [vmem:[#allocation2 + $0x560] sm:$0xff] }
  0x4f   :  { %319 = vmatmul.mubr.f32.vlgmr.msra.gmra.mxu0 %v35_v63  ;;  %387 = vmatprep.subr.mxu1 %v139_v0  ;;  %v213_v63 = vld [vmem:[#allocation2 + $0x558] sm:$0xff]  ;;  %v212_v0 = vld [vmem:[#allocation2 + $0x550] sm:$0xff] }
  0x50   :  { %396 = vmatprep.subr.mxu0 %v201_v1  ;;  %388 = vmatpush2.msra.mxu1 %v138_v2  ;;  %v211_v1 = vld [vmem:[#allocation2 + $0x548] sm:$0xff]  ;;  %v210_v2 = vld [vmem:[#allocation2 + $0x540] sm:$0xff] }
  0x51   :  { %389 = vmatprep.mubr.f32.mxu1 %v38_v3  ;;  %397 = vmatpush1.msra.mxu0 %v200_v4  ;;  %v209_v3 = vld [vmem:[#allocation2 + $0x538] sm:$0xff]  ;;  %v208_v4 = vld [vmem:[#allocation2 + $0x530] sm:$0xff] }
  0x52   :  { %390 = vmatmul.mubr.f32.vlgmr.msra.gmra.mxu1 %v37_v5  ;;  %398 = vmatprep.subr.mxu0 %v199_v6  ;;  %v207_v5 = vld [vmem:[#allocation2 + $0x528] sm:$0xff]  ;;  %v206_v6 = vld [vmem:[#allocation2 + $0x520] sm:$0xff] }
  0x53   :  { %399 = vmatpush1.msra.mxu0 %v198_v7  ;;  %495 = vmatprep.subr.mxu1 %v237_v8  ;;  %v205_v7 = vld [vmem:[#allocation2 + $0x518] sm:$0xff]  ;;  %v204_v8 = vld [vmem:[#allocation2 + $0x510] sm:$0xff] }
  0x54   :  { %400 = vmatprep.subr.mxu0 %v197_v9  ;;  %496 = vmatpush1.msra.mxu1 %v236_v10  ;;  %v203_v9 = vld [vmem:[#allocation2 + $0x508] sm:$0xff]  ;;  %v202_v10 = vld [vmem:[#allocation2 + $0x500] sm:$0xff] }
  0x55   :  { %401 = vmatpush1.msra.mxu0 %v196_v11  ;;  %497 = vmatprep.subr.mxu1 %v235_v12  ;;  %v39_v11 = vld [vmem:[%s916_s0 + $0x20] sm:$0xff]  ;;  %v571_v12 = vld [vmem:[%s919_s3 + $0xf8] sm:$0xff] }
  0x56   :  { %402 = vmatprep.subr.mxu0 %v195_v13  ;;  %460 = vmatprep.mubr.f32.mxu0 %v40_v14  ;;  %v555_v13 = vld [vmem:[%s919_s3 + $0x78] sm:$0xff]  ;;  %v570_v14 = vld [vmem:[%s919_s3 + $0xf0] sm:$0xff] }
  0x57   :  { %403 = vmatpush1.msra.mxu0 %v194_v15  ;;  %498 = vmatpush1.msra.mxu1 %v234_v16  ;;  %v554_v15 = vld [vmem:[%s919_s3 + $0x70] sm:$0xff]  ;;  %v569_v16 = vld [vmem:[%s919_s3 + $0xe8] sm:$0xff] }
  0x58   :  { %404 = vmatprep.subr.mxu0 %v193_v17  ;;  %531 = vmatprep.mubr.f32.mxu1 %v755_v22  ;;  %v553_v17 = vld [vmem:[%s919_s3 + $0x68] sm:$0xff]  ;;  %v566_v22 = vld [vmem:[%s919_s3 + $0xd0] sm:$0xff] }
  0x59   :  { %405 = vmatpush1.msra.mxu0 %v192_v18  ;;  %666 = vmatmul.mubr.msk.f32.vlgmr.msra.gmra.mxu1 %vm250_vm0, %v41_v19  ;;  %v568_v18 = vld [vmem:[%s919_s3 + $0xe0] sm:$0xff] }
  0x5a   :  { %406 = vmatprep.subr.mxu0 %v191_v20  ;;  %668 = vmatprep.subr.mxu1 %v571_v12  ;;  %v552_v19 = vld [vmem:[%s919_s3 + $0x60] sm:$0xff]  ;;  %v567_v20 = vld [vmem:[%s919_s3 + $0xd8] sm:$0xff] }
  0x5b   :  { %407 = vmatpush1.msra.mxu0 %v190_v21  ;;  %669 = vmatpush3.msra.mxu1 %v555_v13  ;;  %v551_v21 = vld [vmem:[%s919_s3 + $0x58] sm:$0xff] }
  0x5c   :  { %408 = vmatprep.subr.mxu0 %v189_v23  ;;  %670 = vmatprep.subr.mxu1 %v570_v14  ;;  %v550_v23 = vld [vmem:[%s919_s3 + $0x50] sm:$0xff] }
  0x5d   :  { %409 = vmatpush1.msra.mxu0 %v188_v24  ;;  %671 = vmatpush3.msra.mxu1 %v554_v15  ;;  %v565_v24 = vld [vmem:[%s919_s3 + $0xc8] sm:$0xff] }
  0x5e   :  { %410 = vmatprep.subr.mxu0 %v187_v25  ;;  %672 = vmatprep.subr.mxu1 %v569_v16  ;;  %v549_v25 = vld [vmem:[%s919_s3 + $0x48] sm:$0xff] }
  0x5f   :  { %411 = vmatpush1.msra.mxu0 %v186_v26  ;;  %673 = vmatpush3.msra.mxu1 %v553_v17  ;;  %v564_v26 = vld [vmem:[%s919_s3 + $0xc0] sm:$0xff] }
  0x60   :  { %412 = vmatprep.subr.mxu0 %v185_v27  ;;  %674 = vmatprep.subr.mxu1 %v568_v18  ;;  %v548_v27 = vld [vmem:[%s919_s3 + $0x40] sm:$0xff] }
  0x61   :  { %413 = vmatpush1.msra.mxu0 %v184_v28  ;;  %675 = vmatpush3.msra.mxu1 %v552_v19  ;;  %v563_v28 = vld [vmem:[%s919_s3 + $0xb8] sm:$0xff] }
  0x62   :  { %414 = vmatprep.subr.mxu0 %v183_v29  ;;  %676 = vmatprep.subr.mxu1 %v567_v20  ;;  %v547_v29 = vld [vmem:[%s919_s3 + $0x38] sm:$0xff] }
  0x63   :  { %415 = vmatpush1.msra.mxu0 %v182_v30  ;;  %677 = vmatpush3.msra.mxu1 %v551_v21  ;;  %v562_v30 = vld [vmem:[%s919_s3 + $0xb0] sm:$0xff] }
  0x64   :  { %416 = vmatprep.subr.mxu0 %v181_v31  ;;  %678 = vmatprep.subr.mxu1 %v566_v22  ;;  %v546_v31 = vld [vmem:[%s919_s3 + $0x30] sm:$0xff] }
  0x65   :  { %417 = vmatpush1.msra.mxu0 %v180_v32  ;;  %679 = vmatpush3.msra.mxu1 %v550_v23  ;;  %v561_v32 = vld [vmem:[%s919_s3 + $0xa8] sm:$0xff] }
  0x66   :  { %418 = vmatprep.subr.mxu0 %v179_v33  ;;  %680 = vmatprep.subr.mxu1 %v565_v24  ;;  %v545_v33 = vld [vmem:[%s919_s3 + $0x28] sm:$0xff] }
  0x67   :  { %419 = vmatpush1.msra.mxu0 %v178_v34  ;;  %681 = vmatpush3.msra.mxu1 %v549_v25  ;;  %v560_v34 = vld [vmem:[%s919_s3 + $0xa0] sm:$0xff] }
  0x68   :  { %420 = vmatprep.subr.mxu0 %v177_v35  ;;  %682 = vmatprep.subr.mxu1 %v564_v26  ;;  %v544_v35 = vld [vmem:[%s919_s3 + $0x20] sm:$0xff] }
  0x69   :  { %421 = vmatpush1.msra.mxu0 %v176_v36  ;;  %683 = vmatpush3.msra.mxu1 %v548_v27  ;;  %v559_v36 = vld [vmem:[%s919_s3 + $0x98] sm:$0xff] }
  0x6a   :  { %422 = vmatprep.subr.mxu0 %v175_v37  ;;  %684 = vmatprep.subr.mxu1 %v563_v28  ;;  %v543_v37 = vld [vmem:[%s919_s3 + $0x18] sm:$0xff] }
  0x6b   :  { %423 = vmatpush1.msra.mxu0 %v174_v38  ;;  %685 = vmatpush3.msra.mxu1 %v547_v29  ;;  %v558_v38 = vld [vmem:[%s919_s3 + $0x90] sm:$0xff] }
  0x6c   :  { %424 = vmatprep.subr.mxu0 %v173_v39  ;;  %686 = vmatprep.subr.mxu1 %v562_v30  ;;  %v542_v39 = vld [vmem:[%s919_s3 + $0x10] sm:$0xff] }
  0x6d   :  { %425 = vmatpush1.msra.mxu0 %v172_v40  ;;  %687 = vmatpush3.msra.mxu1 %v546_v31  ;;  %v557_v40 = vld [vmem:[%s919_s3 + $0x88] sm:$0xff] }
  0x6e   :  { %426 = vmatprep.subr.mxu0 %v171_v41  ;;  %688 = vmatprep.subr.mxu1 %v561_v32  ;;  %v541_v41 = vld [vmem:[%s919_s3 + $0x8] sm:$0xff] }
  0x6f   :  { %427 = vmatpush1.msra.mxu0 %v170_v42  ;;  %689 = vmatpush3.msra.mxu1 %v545_v33  ;;  %v556_v42 = vld [vmem:[%s919_s3 + $0x80] sm:$0xff] }
  0x70   :  { %428 = vmatprep.subr.mxu0 %v233_v43  ;;  %690 = vmatprep.subr.mxu1 %v560_v34  ;;  %v540_v43 = vld [vmem:[%s919_s3] sm:$0xff] }
  0x71   :  { %429 = vmatpush2.msra.mxu0 %v232_v44  ;;  %691 = vmatpush3.msra.mxu1 %v544_v35  ;;  %v240_v44 = vlaneseq }
  0x72   :  { %430 = vmatprep.subr.mxu0 %v231_v45  ;;  %692 = vmatprep.subr.mxu1 %v559_v36 }
  0x73   :  { %431 = vmatpush2.msra.mxu0 %v230_v46  ;;  %693 = vmatpush3.msra.mxu1 %v543_v37  ;;  %v241_v45 = vshrl.u32 %v240_v44, 7 }
  0x74   :  { %432 = vmatprep.subr.mxu0 %v229_v47  ;;  %694 = vmatprep.subr.mxu1 %v558_v38  ;;  %v238_v47 = vld [vmem:[%s918_s2] sm:$0x3] }
  0x75   :  { %433 = vmatpush2.msra.mxu0 %v228_v48  ;;  %695 = vmatpush3.msra.mxu1 %v542_v39  ;;  %v242_v46 = vsub.s32 0, %v241_v45  ;;  %v246_v48 = vsub.s32 1, %v241_v45 }
  0x76   :  { %434 = vmatprep.subr.mxu0 %v227_v49  ;;  %696 = vmatprep.subr.mxu1 %v557_v40 }
  0x77   :  { %435 = vmatpush2.msra.mxu0 %v226_v50  ;;  %697 = vmatpush3.msra.mxu1 %v541_v41  ;;  %v243_v50 = vrot.slane %v238_v47, %v242_v46 }
  0x78   :  { %436 = vmatprep.subr.mxu0 %v225_v51  ;;  %698 = vmatprep.subr.mxu1 %v556_v42  ;;  %v247_v51 = vrot.slane %v238_v47, %v246_v48 }
  0x79   :  { %437 = vmatpush2.msra.mxu0 %v224_v52  ;;  %699 = vmatpush3.msra.mxu1 %v540_v43 }
  0x7a   :  { %438 = vmatprep.subr.mxu0 %v223_v53 }
  0x7b   :  { %439 = vmatpush2.msra.mxu0 %v222_v54 }
  0x7c   :  { %440 = vmatprep.subr.mxu0 %v221_v55 }
  0x7d   :  { %441 = vmatpush2.msra.mxu0 %v220_v56 }
  0x7e   :  { %442 = vmatprep.subr.mxu0 %v219_v57 }
  0x7f   :  { %443 = vmatpush2.msra.mxu0 %v218_v58 }
  0x80   :  { %444 = vmatprep.subr.mxu0 %v217_v59 }
  0x81   :  { %445 = vmatpush2.msra.mxu0 %v216_v60 }
  0x82   :  { %446 = vmatprep.subr.mxu0 %v215_v61 }
  0x83   :  { %447 = vmatpush2.msra.mxu0 %v214_v62 }
  0x84   :  { %448 = vmatprep.subr.mxu0 %v213_v63 }
  0x85   :  { %449 = vmatpush2.msra.mxu0 %v212_v0 }
  0x86   :  { %450 = vmatprep.subr.mxu0 %v211_v1 }
  0x87   :  { %451 = vmatpush2.msra.mxu0 %v210_v2 }
  0x88   :  { %452 = vmatprep.subr.mxu0 %v209_v3 }
  0x89   :  { %453 = vmatpush2.msra.mxu0 %v208_v4 }
  0x8a   :  { %454 = vmatprep.subr.mxu0 %v207_v5 }
  0x8b   :  { %455 = vmatpush2.msra.mxu0 %v206_v6  ;;  %v667_v6 = vld [vmem:[%s920_s4] ss:$0 sm:$0xff] }
  0x8c   :  { %456 = vmatprep.subr.mxu0 %v205_v7 }
  0x8d   :  { %457 = vmatpush2.msra.mxu0 %v204_v8 }
  0x8e   :  { %458 = vmatprep.subr.mxu0 %v203_v9 }
  0x8f   :  { %459 = vmatpush2.msra.mxu0 %v202_v10 }
  0x90   :  { %461 = vmatmul.mubr.f32.vlgmr.msra.gmra.mxu0 %v39_v11 }
 0x10f   :  { %v320_v49 = vpop.f32.mrf.mxu0 }
 0x110   :  { %v321_v54 = vadd.f32 %v320_v49, %v243_v50 }
 0x111   :  { %v322_v52 = vpop.f32.mrf.mxu0 }
 0x112   :  { %v391_v53 = vpop.f32.mrf.mxu1  ;;  %v323_v55 = vadd.f32 %v322_v52, %v247_v51 }
 0x113   :  { %v392_v57 = vadd.f32 %v391_v53, %v321_v54 }
 0x114   :  { %v393_v56 = vpop.f32.mrf.mxu1 }
 0x115   :  { %v394_v60 = vadd.f32 %v393_v56, %v323_v55 }
 0x119   :  { %v533_v59 = vpop.f32.mrf.mxu1 }
 0x11b   :  { %v535_v1 = vpop.f32.mrf.mxu1 }
 0x150   :  { %v462_v58 = vpop.f32.mrf.mxu0 }
 0x151   :  { %v463_v61 = vadd.f32 %v462_v58, %v392_v57 }
 0x152   :  { %v464_v62 = vpop.f32.mrf.mxu0 }
 0x153   :  { %v465_v63 = vadd.f32 %v464_v62, %v394_v60  ;;  %v534_v0 = vadd.f32 %v533_v59, %v463_v61 }
 0x155   :  { %v536_v2 = vadd.f32 %v535_v1, %v465_v63  ;;  %v538_v4 = vmax.f32 %v534_v0, 0.0 }
 0x157   :  { %v539_v3 = vmax.f32 %v536_v2, 0.0 }
 0x159   :  { %643 = vmatprep.mubr.f32.mxu1 %v539_v3 }
 0x15a   :  { %644 = vmatmul.mubr.f32.vlgmr.msra.gmra.mxu1 %v538_v4 }
 0x21a   :  { %v700_v5 = vpop.f32.mrf.mxu1 }
 0x21c   :  { %v701_v7 = vpop.f32.mrf.mxu1 }
 0x21d   :  { %v702_v8 = vadd.f32 %v701_v7, %v700_v5 }
 0x21f   :  { %v646_v9 = vadd.f32 %v702_v8, %v667_v6 }
 0x221   :  { %650 = vst.msk [vmem:[#allocation5] sm:$0xff] %vm649_vm1, %v646_v9 }
 0x222   :  { %739 = shalt.err (!%p736_p9)
}
 0x223   :  { %660 = dma.vmem_to_hbm [thread:$0]  %s658_s1, 128, %s921_s5, [#allocation4]  }
 0x224   :  { %750 = dma.done.wait [#allocation4], 128  }
 0x225   :  { %751 = vsyncadd [#allocation4], 4294967168 }
 0x226   :  { %664 = vsyncpa [#allocation3], 1 }
 0x227   :  { %665 = vsyncpa [#allocation4], 1 }

</bundles_post_ra>
